<compile_context>
chip_gen: v5e
topology: v5e:2x2
jax: 0.10.0
libtpu: 0.0.40
codegen_flags: <defaults>
</compile_context>

<pallas_src>
import functools

import jax
import jax.numpy as jnp
from jax import lax
from jax.experimental import pallas as pl
from jax.experimental.pallas import tpu as pltpu


def _bert_embeddings_kernel(ids_ref,             # scalar-prefetch SMEM: (B, S) int32 token ids
                            word_hbm,            # (V, H) word table, stays in HBM
                            tti_ref,             # (1, TS, 1) int32 token-type ids (VMEM)
                            pos_ref,             # (P, H) full position table, resident in VMEM
                            typ_ref,             # (T, H) tiny token-type table (VMEM)
                            gamma_ref, beta_ref, # (1, H) VMEM
                            out_ref,             # (1, TS, H) VMEM
                            wbuf, sem,           # scratch: (TS, H) VMEM + one DMA semaphore
                            *, eps, tile_s):
    b = pl.program_id(0)
    s = pl.program_id(1)
    base = pl.multiple_of(s * tile_s, tile_s)
    H = out_ref.shape[-1]
    T = typ_ref.shape[0]

    # ---- 1. Word embeddings: issue all TS row-gather DMAs (unrolled issue loop). ----
    def issue(r, carry):
        tok = ids_ref[b, base + r]
        pltpu.make_async_copy(word_hbm.at[tok], wbuf.at[r], sem).start()
        return carry
    lax.fori_loop(0, tile_s, issue, 0, unroll=min(8, tile_s))

    # ---- 2. While the gathers are in flight: pos + token-type partial sum (f32, VPU). ----
    tti = tti_ref[0]                                                   # (TS, 1) int32
    typ_emb = jnp.broadcast_to(
        typ_ref[pl.ds(0, 1), :].astype(jnp.float32), (tile_s, H))
    for t in range(1, T):                                              # T is tiny & static
        typ_emb = jnp.where(tti == t,
                            typ_ref[pl.ds(t, 1), :].astype(jnp.float32),
                            typ_emb)
    partial = pos_ref[pl.ds(base, tile_s), :].astype(jnp.float32) + typ_emb

    # ---- 3. Single aggregate wait: TS row copies each signaled H*itemsize bytes on `sem`;
    #          this descriptor waits for exactly tile_s*H*itemsize, so byte counts match. ----
    pltpu.make_async_copy(word_hbm.at[pl.ds(0, tile_s)], wbuf, sem).wait()
    emb = wbuf[...].astype(jnp.float32) + partial

    # ---- 4. Fused LayerNorm over hidden axis (biased variance), written straight out. ----
    mean = jnp.mean(emb, axis=-1, keepdims=True)
    var = jnp.mean(emb * emb, axis=-1, keepdims=True) - mean * mean
    inv = lax.rsqrt(var + eps)
    out_ref[0] = ((emb - mean) * inv * gamma_ref[...].astype(jnp.float32)
                  + beta_ref[...].astype(jnp.float32)).astype(out_ref.dtype)
    # TODO(synk): nn.Dropout is identity in eval mode; training-mode stochastic masking
    # (pltpu.prng_*) is intentionally not applied here.


def _pick_seq_tile(S):
    for ts in (512, 256, 128, 64, 32, 16, 8):
        if S % ts == 0:
            return ts
    return S   # fallback: block == full seq dim, always layout-legal


def bert_embeddings(x, word_tab, pos_tab, typ_tab, gamma, beta,
                    token_type_ids=None, position_ids=None, eps=1e-12):
    B, S = x.shape
    V, H = word_tab.shape
    P = pos_tab.shape[0]
    T = typ_tab.shape[0]
    assert S <= P, "sequence length exceeds max_position_embeddings"

    if position_ids is not None:
        # TODO(synk): explicit (non-arange) position_ids would need a second DMA row-gather;
        # this kernel implements the module's default arange path.
        raise NotImplementedError("custom position_ids are not supported")
    if token_type_ids is None:
        token_type_ids = jnp.zeros_like(x)

    TS = _pick_seq_tile(S)
    assert S % TS == 0

    ids = x.astype(jnp.int32)
    tti3 = token_type_ids.astype(jnp.int32).reshape(B, S, 1)
    gamma2 = gamma.reshape(1, H)
    beta2 = beta.reshape(1, H)

    kernel = functools.partial(_bert_embeddings_kernel, eps=eps, tile_s=TS)

    # Memory-bound cost estimate: gathered word rows + resident tables + f32 output + ids.
    cost = pl.CostEstimate(
        flops=10 * B * S * H,
        transcendentals=B * S,
        bytes_accessed=(B * S * H * word_tab.dtype.itemsize     # gathered word rows
                        + P * H * pos_tab.dtype.itemsize        # pos table (read once, resident)
                        + T * H * typ_tab.dtype.itemsize        # typ table (read once)
                        + B * S * H * 4                         # f32 output
                        + 2 * B * S * 4),                       # token ids + token-type ids
    )

    return pl.pallas_call(
        kernel,
        out_shape=jax.ShapeDtypeStruct((B, S, H), jnp.float32),
        grid_spec=pltpu.PrefetchScalarGridSpec(
            num_scalar_prefetch=1,                       # token ids -> SMEM (DMA addressing)
            grid=(B, S // TS),
            in_specs=[
                pl.BlockSpec(memory_space=pl.ANY),                       # word table in HBM
                pl.BlockSpec((1, TS, 1), lambda b, s, ids: (b, s, 0)),   # token-type ids (VMEM)
                pl.BlockSpec((P, H), lambda b, s, ids: (0, 0)),          # full pos table, resident
                pl.BlockSpec((T, H), lambda b, s, ids: (0, 0)),          # tiny typ table, resident
                pl.BlockSpec((1, H), lambda b, s, ids: (0, 0)),          # gamma
                pl.BlockSpec((1, H), lambda b, s, ids: (0, 0)),          # beta
            ],
            out_specs=pl.BlockSpec((1, TS, H), lambda b, s, ids: (b, s, 0)),
            scratch_shapes=[
                pltpu.VMEM((TS, H), word_tab.dtype),     # gathered word rows (table dtype)
                pltpu.SemaphoreType.DMA(()),             # single shared completion semaphore
            ],
        ),
        compiler_params=pltpu.CompilerParams(
            dimension_semantics=("parallel", "parallel")),
        cost_estimate=cost,
    )(ids, word_tab, tti3, pos_tab, typ_tab, gamma2, beta2)


def reference(x, word_tab, pos_tab, typ_tab, gamma, beta, token_type_ids=None, eps=1e-12):
    B, S = x.shape
    position_ids = jnp.broadcast_to(jnp.arange(S, dtype=jnp.int32)[None, :], (B, S))
    if token_type_ids is None:
        token_type_ids = jnp.zeros_like(x)
    emb = word_tab[x] + pos_tab[position_ids] + typ_tab[token_type_ids]
    mean = emb.mean(-1, keepdims=True)
    var = ((emb - mean) ** 2).mean(-1, keepdims=True)
    return (emb - mean) / jnp.sqrt(var + eps) * gamma[None, None, :] + beta[None, None, :]


if __name__ == "__main__":
    # Small synthetic "config"
    vocab_size = 100
    hidden_size = 32
    max_position_embeddings = 64
    type_vocab_size = 2
    layer_norm_eps = 1e-12
    B, S = 2, 8

    key = jax.random.PRNGKey(0)
    k_w, k_p, k_t, k_x, k_tt = jax.random.split(key, 5)

    # nn.Embedding default init ~ N(0, 1); padding_idx=0 row zeroed (forward just reads it).
    word_tab = jax.random.normal(k_w, (vocab_size, hidden_size), jnp.float32)
    word_tab = word_tab.at[0].set(0.0)
    pos_tab = jax.random.normal(k_p, (max_position_embeddings, hidden_size), jnp.float32)
    typ_tab = jax.random.normal(k_t, (type_vocab_size, hidden_size), jnp.float32)
    # nn.LayerNorm defaults: weight=1, bias=0.
    gamma = jnp.ones((hidden_size,), jnp.float32)
    beta = jnp.zeros((hidden_size,), jnp.float32)

    x = jax.random.randint(k_x, (B, S), 0, vocab_size, dtype=jnp.int32)
    token_type_ids = jax.random.randint(k_tt, (B, S), 0, type_vocab_size, dtype=jnp.int32)

    out = bert_embeddings(x, word_tab, pos_tab, typ_tab, gamma, beta,
                          token_type_ids=token_type_ids, eps=layer_norm_eps)
    out = jax.block_until_ready(out)

    ref = reference(x, word_tab, pos_tab, typ_tab, gamma, beta,
                    token_type_ids=token_type_ids, eps=layer_norm_eps)
    assert out.shape == (B, S, hidden_size)
    assert jnp.allclose(out, ref, atol=1e-5, rtol=1e-5), "mismatch vs JAX reference"

    print("KERNEL_OK")
</pallas_src>

<mosaic_0001>
module attributes {stable_mosaic.version = 11 : i64} {
  func.func @_bert_embeddings_kernel(%arg0: i32, %arg1: i32, %arg2: memref<2x8xi32, #tpu.memory_space<smem>>, %arg3: memref<100x32xf32, #tpu.memory_space<any>>, %arg4: memref<1x8x1xi32, #tpu.memory_space<vmem>>, %arg5: memref<64x32xf32, #tpu.memory_space<vmem>>, %arg6: memref<2x32xf32, #tpu.memory_space<vmem>>, %arg7: memref<1x32xf32, #tpu.memory_space<vmem>>, %arg8: memref<1x32xf32, #tpu.memory_space<vmem>>, %arg9: memref<1x8x32xf32, #tpu.memory_space<vmem>>, %arg10: memref<8x32xf32, #tpu.memory_space<vmem>>, %arg11: memref<!tpu.dma_semaphore, #tpu.memory_space<semaphore_mem>>) attributes {dimension_semantics = [#tpu.dimension_semantics<parallel>, #tpu.dimension_semantics<parallel>], iteration_bounds = array<i64: 2, 1>, scalar_prefetch = 1 : i64, scratch_operands = 2 : i64, tpu.core_type = #tpu.core_type<tc>, window_params = [{}, {transform_indices = @transform_1, window_bounds = array<i64: 1, 8, 1>}, {pipeline_mode = #tpu.pipeline_mode<synchronous>, transform_indices = @transform_2, window_bounds = array<i64: 64, 32>}, {pipeline_mode = #tpu.pipeline_mode<synchronous>, transform_indices = @transform_3, window_bounds = array<i64: 2, 32>}, {pipeline_mode = #tpu.pipeline_mode<synchronous>, transform_indices = @transform_4, window_bounds = array<i64: 1, 32>}, {pipeline_mode = #tpu.pipeline_mode<synchronous>, transform_indices = @transform_5, window_bounds = array<i64: 1, 32>}, {transform_indices = @transform_6, window_bounds = array<i64: 1, 8, 32>}]} {
    %c8_i32 = arith.constant 8 : i32
    %0 = arith.muli %arg1, %c8_i32 : i32
    %1 = tpu.assume_multiple %0, 8 : i32
    %c0_i32 = arith.constant 0 : i32
    %2 = arith.addi %1, %c0_i32 : i32
    %3 = arith.index_cast %arg0 : i32 to index
    %4 = arith.index_cast %2 : i32 to index
    %5 = memref.load %arg2[%3, %4] : memref<2x8xi32, #tpu.memory_space<smem>>
    %c0_i32_0 = arith.constant 0 : i32
    %6 = tpu.memref_slice %arg3[%5, %c0_i32_0] : memref<100x32xf32, #tpu.memory_space<any>> -> memref<1x32xf32, #tpu.memory_space<any>>
    %7 = tpu.memref_squeeze %6 : memref<1x32xf32, #tpu.memory_space<any>> -> memref<32xf32, #tpu.memory_space<any>>
    %c0_i32_1 = arith.constant 0 : i32
    %8 = tpu.memref_slice %arg10[%c0_i32, %c0_i32_1] : memref<8x32xf32, #tpu.memory_space<vmem>> -> memref<1x32xf32, #tpu.memory_space<vmem>>
    %9 = tpu.memref_squeeze %8 : memref<1x32xf32, #tpu.memory_space<vmem>> -> memref<32xf32, #tpu.memory_space<vmem>>
    tpu.enqueue_dma source(%7 : memref<32xf32, #tpu.memory_space<any>>) target(%9 : memref<32xf32, #tpu.memory_space<vmem>>) target_semaphore(%arg11 : memref<!tpu.dma_semaphore, #tpu.memory_space<semaphore_mem>>)
    %c1_i32 = arith.constant 1 : i32
    %10 = arith.addi %1, %c1_i32 : i32
    %11 = arith.index_cast %arg0 : i32 to index
    %12 = arith.index_cast %10 : i32 to index
    %13 = memref.load %arg2[%11, %12] : memref<2x8xi32, #tpu.memory_space<smem>>
    %c0_i32_2 = arith.constant 0 : i32
    %14 = tpu.memref_slice %arg3[%13, %c0_i32_2] : memref<100x32xf32, #tpu.memory_space<any>> -> memref<1x32xf32, #tpu.memory_space<any>>
    %15 = tpu.memref_squeeze %14 : memref<1x32xf32, #tpu.memory_space<any>> -> memref<32xf32, #tpu.memory_space<any>>
    %c0_i32_3 = arith.constant 0 : i32
    %16 = tpu.memref_slice %arg10[%c1_i32, %c0_i32_3] : memref<8x32xf32, #tpu.memory_space<vmem>> -> memref<1x32xf32, #tpu.memory_space<vmem>>
    %17 = tpu.memref_squeeze %16 : memref<1x32xf32, #tpu.memory_space<vmem>> -> memref<32xf32, #tpu.memory_space<vmem>>
    tpu.enqueue_dma source(%15 : memref<32xf32, #tpu.memory_space<any>>) target(%17 : memref<32xf32, #tpu.memory_space<vmem>>) target_semaphore(%arg11 : memref<!tpu.dma_semaphore, #tpu.memory_space<semaphore_mem>>)
    %c2_i32 = arith.constant 2 : i32
    %18 = arith.addi %1, %c2_i32 : i32
    %19 = arith.index_cast %arg0 : i32 to index
    %20 = arith.index_cast %18 : i32 to index
    %21 = memref.load %arg2[%19, %20] : memref<2x8xi32, #tpu.memory_space<smem>>
    %c0_i32_4 = arith.constant 0 : i32
    %22 = tpu.memref_slice %arg3[%21, %c0_i32_4] : memref<100x32xf32, #tpu.memory_space<any>> -> memref<1x32xf32, #tpu.memory_space<any>>
    %23 = tpu.memref_squeeze %22 : memref<1x32xf32, #tpu.memory_space<any>> -> memref<32xf32, #tpu.memory_space<any>>
    %c0_i32_5 = arith.constant 0 : i32
    %24 = tpu.memref_slice %arg10[%c2_i32, %c0_i32_5] : memref<8x32xf32, #tpu.memory_space<vmem>> -> memref<1x32xf32, #tpu.memory_space<vmem>>
    %25 = tpu.memref_squeeze %24 : memref<1x32xf32, #tpu.memory_space<vmem>> -> memref<32xf32, #tpu.memory_space<vmem>>
    tpu.enqueue_dma source(%23 : memref<32xf32, #tpu.memory_space<any>>) target(%25 : memref<32xf32, #tpu.memory_space<vmem>>) target_semaphore(%arg11 : memref<!tpu.dma_semaphore, #tpu.memory_space<semaphore_mem>>)
    %c3_i32 = arith.constant 3 : i32
    %26 = arith.addi %1, %c3_i32 : i32
    %27 = arith.index_cast %arg0 : i32 to index
    %28 = arith.index_cast %26 : i32 to index
    %29 = memref.load %arg2[%27, %28] : memref<2x8xi32, #tpu.memory_space<smem>>
    %c0_i32_6 = arith.constant 0 : i32
    %30 = tpu.memref_slice %arg3[%29, %c0_i32_6] : memref<100x32xf32, #tpu.memory_space<any>> -> memref<1x32xf32, #tpu.memory_space<any>>
    %31 = tpu.memref_squeeze %30 : memref<1x32xf32, #tpu.memory_space<any>> -> memref<32xf32, #tpu.memory_space<any>>
    %c0_i32_7 = arith.constant 0 : i32
    %32 = tpu.memref_slice %arg10[%c3_i32, %c0_i32_7] : memref<8x32xf32, #tpu.memory_space<vmem>> -> memref<1x32xf32, #tpu.memory_space<vmem>>
    %33 = tpu.memref_squeeze %32 : memref<1x32xf32, #tpu.memory_space<vmem>> -> memref<32xf32, #tpu.memory_space<vmem>>
    tpu.enqueue_dma source(%31 : memref<32xf32, #tpu.memory_space<any>>) target(%33 : memref<32xf32, #tpu.memory_space<vmem>>) target_semaphore(%arg11 : memref<!tpu.dma_semaphore, #tpu.memory_space<semaphore_mem>>)
    %c4_i32 = arith.constant 4 : i32
    %34 = arith.addi %1, %c4_i32 : i32
    %35 = arith.index_cast %arg0 : i32 to index
    %36 = arith.index_cast %34 : i32 to index
    %37 = memref.load %arg2[%35, %36] : memref<2x8xi32, #tpu.memory_space<smem>>
    %c0_i32_8 = arith.constant 0 : i32
    %38 = tpu.memref_slice %arg3[%37, %c0_i32_8] : memref<100x32xf32, #tpu.memory_space<any>> -> memref<1x32xf32, #tpu.memory_space<any>>
    %39 = tpu.memref_squeeze %38 : memref<1x32xf32, #tpu.memory_space<any>> -> memref<32xf32, #tpu.memory_space<any>>
    %c0_i32_9 = arith.constant 0 : i32
    %40 = tpu.memref_slice %arg10[%c4_i32, %c0_i32_9] : memref<8x32xf32, #tpu.memory_space<vmem>> -> memref<1x32xf32, #tpu.memory_space<vmem>>
    %41 = tpu.memref_squeeze %40 : memref<1x32xf32, #tpu.memory_space<vmem>> -> memref<32xf32, #tpu.memory_space<vmem>>
    tpu.enqueue_dma source(%39 : memref<32xf32, #tpu.memory_space<any>>) target(%41 : memref<32xf32, #tpu.memory_space<vmem>>) target_semaphore(%arg11 : memref<!tpu.dma_semaphore, #tpu.memory_space<semaphore_mem>>)
    %c5_i32 = arith.constant 5 : i32
    %42 = arith.addi %1, %c5_i32 : i32
    %43 = arith.index_cast %arg0 : i32 to index
    %44 = arith.index_cast %42 : i32 to index
    %45 = memref.load %arg2[%43, %44] : memref<2x8xi32, #tpu.memory_space<smem>>
    %c0_i32_10 = arith.constant 0 : i32
    %46 = tpu.memref_slice %arg3[%45, %c0_i32_10] : memref<100x32xf32, #tpu.memory_space<any>> -> memref<1x32xf32, #tpu.memory_space<any>>
    %47 = tpu.memref_squeeze %46 : memref<1x32xf32, #tpu.memory_space<any>> -> memref<32xf32, #tpu.memory_space<any>>
    %c0_i32_11 = arith.constant 0 : i32
    %48 = tpu.memref_slice %arg10[%c5_i32, %c0_i32_11] : memref<8x32xf32, #tpu.memory_space<vmem>> -> memref<1x32xf32, #tpu.memory_space<vmem>>
    %49 = tpu.memref_squeeze %48 : memref<1x32xf32, #tpu.memory_space<vmem>> -> memref<32xf32, #tpu.memory_space<vmem>>
    tpu.enqueue_dma source(%47 : memref<32xf32, #tpu.memory_space<any>>) target(%49 : memref<32xf32, #tpu.memory_space<vmem>>) target_semaphore(%arg11 : memref<!tpu.dma_semaphore, #tpu.memory_space<semaphore_mem>>)
    %c6_i32 = arith.constant 6 : i32
    %50 = arith.addi %1, %c6_i32 : i32
    %51 = arith.index_cast %arg0 : i32 to index
    %52 = arith.index_cast %50 : i32 to index
    %53 = memref.load %arg2[%51, %52] : memref<2x8xi32, #tpu.memory_space<smem>>
    %c0_i32_12 = arith.constant 0 : i32
    %54 = tpu.memref_slice %arg3[%53, %c0_i32_12] : memref<100x32xf32, #tpu.memory_space<any>> -> memref<1x32xf32, #tpu.memory_space<any>>
    %55 = tpu.memref_squeeze %54 : memref<1x32xf32, #tpu.memory_space<any>> -> memref<32xf32, #tpu.memory_space<any>>
    %c0_i32_13 = arith.constant 0 : i32
    %56 = tpu.memref_slice %arg10[%c6_i32, %c0_i32_13] : memref<8x32xf32, #tpu.memory_space<vmem>> -> memref<1x32xf32, #tpu.memory_space<vmem>>
    %57 = tpu.memref_squeeze %56 : memref<1x32xf32, #tpu.memory_space<vmem>> -> memref<32xf32, #tpu.memory_space<vmem>>
    tpu.enqueue_dma source(%55 : memref<32xf32, #tpu.memory_space<any>>) target(%57 : memref<32xf32, #tpu.memory_space<vmem>>) target_semaphore(%arg11 : memref<!tpu.dma_semaphore, #tpu.memory_space<semaphore_mem>>)
    %c7_i32 = arith.constant 7 : i32
    %58 = arith.addi %1, %c7_i32 : i32
    %59 = arith.index_cast %arg0 : i32 to index
    %60 = arith.index_cast %58 : i32 to index
    %61 = memref.load %arg2[%59, %60] : memref<2x8xi32, #tpu.memory_space<smem>>
    %c0_i32_14 = arith.constant 0 : i32
    %62 = tpu.memref_slice %arg3[%61, %c0_i32_14] : memref<100x32xf32, #tpu.memory_space<any>> -> memref<1x32xf32, #tpu.memory_space<any>>
    %63 = tpu.memref_squeeze %62 : memref<1x32xf32, #tpu.memory_space<any>> -> memref<32xf32, #tpu.memory_space<any>>
    %c0_i32_15 = arith.constant 0 : i32
    %64 = tpu.memref_slice %arg10[%c7_i32, %c0_i32_15] : memref<8x32xf32, #tpu.memory_space<vmem>> -> memref<1x32xf32, #tpu.memory_space<vmem>>
    %65 = tpu.memref_squeeze %64 : memref<1x32xf32, #tpu.memory_space<vmem>> -> memref<32xf32, #tpu.memory_space<vmem>>
    tpu.enqueue_dma source(%63 : memref<32xf32, #tpu.memory_space<any>>) target(%65 : memref<32xf32, #tpu.memory_space<vmem>>) target_semaphore(%arg11 : memref<!tpu.dma_semaphore, #tpu.memory_space<semaphore_mem>>)
    %c8_i32_16 = arith.constant 8 : i32
    %c0 = arith.constant 0 : index
    %c0_17 = arith.constant 0 : index
    %c0_18 = arith.constant 0 : index
    %66 = vector.load %arg4[%c0, %c0_17, %c0_18] : memref<1x8x1xi32, #tpu.memory_space<vmem>>, vector<1x8x1xi32>
    %67 = vector.shape_cast %66 : vector<1x8x1xi32> to vector<8x1xi32>
    %c0_19 = arith.constant 0 : index
    %c0_20 = arith.constant 0 : index
    %68 = vector.load %arg6[%c0_19, %c0_20] : memref<2x32xf32, #tpu.memory_space<vmem>>, vector<1x32xf32>
    %69 = vector.shape_cast %68 : vector<1x32xf32> to vector<1x32xf32>
    %70 = vector.broadcast %69 : vector<1x32xf32> to vector<8x32xf32>
    %c1_i32_21 = arith.constant 1 : i32
    %71 = vector.broadcast %c1_i32_21 : i32 to vector<8x1xi32>
    %72 = arith.cmpi eq, %67, %71 : vector<8x1xi32>
    %c1 = arith.constant 1 : index
    %c0_22 = arith.constant 0 : index
    %73 = vector.load %arg6[%c1, %c0_22] : memref<2x32xf32, #tpu.memory_space<vmem>>, vector<1x32xf32>
    %74 = vector.shape_cast %72 : vector<8x1xi1> to vector<8x1xi1>
    %75 = vector.broadcast %74 : vector<8x1xi1> to vector<8x32xi1>
    %76 = vector.shape_cast %73 : vector<1x32xf32> to vector<1x32xf32>
    %77 = vector.broadcast %76 : vector<1x32xf32> to vector<8x32xf32>
    %78 = arith.select %75, %77, %70 : vector<8x32xi1>, vector<8x32xf32>
    %79 = arith.index_cast %1 : i32 to index
    %c0_23 = arith.constant 0 : index
    %80 = vector.load %arg5[%79, %c0_23] : memref<64x32xf32, #tpu.memory_space<vmem>>, vector<8x32xf32>
    %81 = arith.addf %80, %78 : vector<8x32xf32>
    %c0_i32_24 = arith.constant 0 : i32
    %c0_i32_25 = arith.constant 0 : i32
    %82 = tpu.memref_slice %arg3[%c0_i32_24, %c0_i32_25] : memref<100x32xf32, #tpu.memory_space<any>> -> memref<8x32xf32, #tpu.memory_space<any>>
    tpu.wait_dma2 semaphore(%arg11 : memref<!tpu.dma_semaphore, #tpu.memory_space<semaphore_mem>>) src(%82 : memref<8x32xf32, #tpu.memory_space<any>>) dst(%arg10 : memref<8x32xf32, #tpu.memory_space<vmem>>)
    %c0_26 = arith.constant 0 : index
    %c0_27 = arith.constant 0 : index
    %83 = vector.load %arg10[%c0_26, %c0_27] : memref<8x32xf32, #tpu.memory_space<vmem>>, vector<8x32xf32>
    %84 = arith.addf %83, %81 : vector<8x32xf32>
    %cst = arith.constant dense<0.000000e+00> : vector<8xf32>
    %85 = vector.multi_reduction <add>, %84, %cst [1] : vector<8x32xf32> to vector<8xf32>
    %86 = vector.shape_cast %85 : vector<8xf32> to vector<8x1xf32>
    %cst_28 = arith.constant 3.200000e+01 : f32
    %87 = vector.broadcast %cst_28 : f32 to vector<8x1xf32>
    %88 = arith.divf %86, %87 : vector<8x1xf32>
    %89 = arith.mulf %84, %84 : vector<8x32xf32>
    %cst_29 = arith.constant dense<0.000000e+00> : vector<8xf32>
    %90 = vector.multi_reduction <add>, %89, %cst_29 [1] : vector<8x32xf32> to vector<8xf32>
    %91 = vector.shape_cast %90 : vector<8xf32> to vector<8x1xf32>
    %cst_30 = arith.constant 3.200000e+01 : f32
    %92 = vector.broadcast %cst_30 : f32 to vector<8x1xf32>
    %93 = arith.divf %91, %92 : vector<8x1xf32>
    %94 = arith.mulf %88, %88 : vector<8x1xf32>
    %95 = arith.subf %93, %94 : vector<8x1xf32>
    %cst_31 = arith.constant 9.99999996E-13 : f32
    %96 = vector.broadcast %cst_31 : f32 to vector<8x1xf32>
    %97 = arith.addf %95, %96 : vector<8x1xf32>
    %98 = math.rsqrt %97 : vector<8x1xf32>
    %99 = vector.broadcast %88 : vector<8x1xf32> to vector<8x32xf32>
    %100 = arith.subf %84, %99 : vector<8x32xf32>
    %101 = vector.broadcast %98 : vector<8x1xf32> to vector<8x32xf32>
    %102 = arith.mulf %100, %101 : vector<8x32xf32>
    %c0_32 = arith.constant 0 : index
    %c0_33 = arith.constant 0 : index
    %103 = vector.load %arg7[%c0_32, %c0_33] : memref<1x32xf32, #tpu.memory_space<vmem>>, vector<1x32xf32>
    %104 = vector.broadcast %103 : vector<1x32xf32> to vector<8x32xf32>
    %105 = arith.mulf %102, %104 : vector<8x32xf32>
    %c0_34 = arith.constant 0 : index
    %c0_35 = arith.constant 0 : index
    %106 = vector.load %arg8[%c0_34, %c0_35] : memref<1x32xf32, #tpu.memory_space<vmem>>, vector<1x32xf32>
    %107 = vector.broadcast %106 : vector<1x32xf32> to vector<8x32xf32>
    %108 = arith.addf %105, %107 : vector<8x32xf32>
    %c0_36 = arith.constant 0 : index
    %c0_37 = arith.constant 0 : index
    %c0_38 = arith.constant 0 : index
    %109 = vector.load %arg9[%c0_36, %c0_37, %c0_38] : memref<1x8x32xf32, #tpu.memory_space<vmem>>, vector<1x8x32xf32>
    %110 = vector.shape_cast %109 : vector<1x8x32xf32> to vector<8x32xf32>
    %111 = vector.shape_cast %108 : vector<8x32xf32> to vector<1x8x32xf32>
    tpu.vector_store %arg9[%c0_36, %c0_37, %c0_38], %111 {strides = array<i32>} : memref<1x8x32xf32, #tpu.memory_space<vmem>>, vector<1x8x32xf32>,
    return
  }
  func.func @transform_1(%arg0: i32, %arg1: i32, %arg2: memref<2x8xi32, #tpu.memory_space<smem>>) -> (i32, i32, i32) {
    %c0_i32 = arith.constant 0 : i32
    %c0_i32_0 = arith.constant 0 : i32
    return %arg0, %arg1, %c0_i32 : i32, i32, i32
  }
  func.func @transform_2(%arg0: i32, %arg1: i32, %arg2: memref<2x8xi32, #tpu.memory_space<smem>>) -> (i32, i32) {
    %c0_i32 = arith.constant 0 : i32
    %c0_i32_0 = arith.constant 0 : i32
    %c0_i32_1 = arith.constant 0 : i32
    return %c0_i32, %c0_i32_0 : i32, i32
  }
  func.func @transform_3(%arg0: i32, %arg1: i32, %arg2: memref<2x8xi32, #tpu.memory_space<smem>>) -> (i32, i32) {
    %c0_i32 = arith.constant 0 : i32
    %c0_i32_0 = arith.constant 0 : i32
    %c0_i32_1 = arith.constant 0 : i32
    return %c0_i32, %c0_i32_0 : i32, i32
  }
  func.func @transform_4(%arg0: i32, %arg1: i32, %arg2: memref<2x8xi32, #tpu.memory_space<smem>>) -> (i32, i32) {
    %c0_i32 = arith.constant 0 : i32
    %c0_i32_0 = arith.constant 0 : i32
    %c0_i32_1 = arith.constant 0 : i32
    return %c0_i32, %c0_i32_0 : i32, i32
  }
  func.func @transform_5(%arg0: i32, %arg1: i32, %arg2: memref<2x8xi32, #tpu.memory_space<smem>>) -> (i32, i32) {
    %c0_i32 = arith.constant 0 : i32
    %c0_i32_0 = arith.constant 0 : i32
    %c0_i32_1 = arith.constant 0 : i32
    return %c0_i32, %c0_i32_0 : i32, i32
  }
  func.func @transform_6(%arg0: i32, %arg1: i32, %arg2: memref<2x8xi32, #tpu.memory_space<smem>>) -> (i32, i32, i32) {
    %c0_i32 = arith.constant 0 : i32
    %c0_i32_0 = arith.constant 0 : i32
    return %arg0, %arg1, %c0_i32 : i32, i32, i32
  }
}

</mosaic_0001>

<bundles_post_ra>
// kernel: tpu_custom_call.1
= control target key start
LH: loop header
LB: loop body
LE: loop exit
PB: predicated region body
PF: predicated region fallthrough
CT: control target
= control target key end

     0   :  { %s996_s27 = smov [#allocation5]   ;;  %s1206_s0 = inlined_call_operand.vmem [shape: s32[2,8], index: 0, kind: input, shape index: {}]   ;;  %s1207_s1 = inlined_call_operand.vmem [shape: f32[100,32], index: 1, kind: input, shape index: {}]   ;;  %s1208_s2 = inlined_call_operand.vmem [shape: s32[2,8,1], index: 2, kind: input, shape index: {}]   ;;  %s1209_s3 = inlined_call_operand.vmem [shape: f32[64,32], index: 3, kind: input, shape index: {}]   ;;  %s1210_s4 = inlined_call_operand.vmem [shape: f32[2,32], index: 4, kind: input, shape index: {}]   ;;  %s1211_s5 = inlined_call_operand.vmem [shape: f32[1,32], index: 5, kind: input, shape index: {}]   ;;  %s1212_s6 = inlined_call_operand.vmem [shape: f32[1,32], index: 6, kind: input, shape index: {}]   ;;  %s1213_s7 = inlined_call_operand.hbm [shape: f32[2,8,32], index: 7, kind: output, shape index: {}]  }
   0x1   :  { %s13_s26 = sshll.u32 %s1206_s0, 4  ;;  %s14_s26 = int_to_ptr.vmem [resolvable:$true] %s13_s26 }
   0x2   :  { %16 = dma.vmem_to_smem %s14_s26, 32, %s996_s27, [#allocation4] }
   0x3   :  { %964 = dma.done.wait [#allocation4], 32 }
   0x4   :  { %965 = vsyncadd [#allocation4], 4294967264 }
   0x5   :  { %19 = sfence }
   0x6   :  { %20 = vsyncpa [#allocation7], 0 }
   0x7   :  { %22 = vsyncpa [#allocation7 + $0x1], 0  ;;  %s1042_s28 = smov 0   ;;  %s1044_s29 = smov 0  }
   0x8   :  { %s1046_s30 = smov 0   ;;  %s1048_s8 = smov 0  }
   0x9   :  { %s1050_s9 = smov 0   ;;  %s1052_s10 = smov 0  }
   0xa LB: > { %1217 = sst [smem:[#allocation19_spill]] %s990_s9  ;;  %s813_s0 = sadd.s32 4294967295, %s994_s10   ;;  %s994_s10 = sphi %s1052_s10, %s28_s10   ;;  %s990_s9 = sphi %s1050_s9, %s1225_s9   ;;  %s986_s8 = sphi %s1048_s8, %s1224_s8   ;;  %s982_s30 = sphi %s1046_s30, %s1228_s30   ;;  %s978_s29 = sphi %s1044_s29, %s1227_s29   ;;  %s974_s28 = sphi %s1042_s28, %s1226_s28  }
   0xb   : > { %s814_s11 = sadd.s32 4294967294, %s994_s10   ;;  %s40_s12 = sadd.s32 1, %s990_s9 }
   0xc   : > { %s161_s13 = sadd.s32 1, %s982_s30  ;;  %p42_p0 = scmp.ge.s32.totalorder %s40_s12, 2 }
   0xd   : > { %p171_p1 = scmp.ne.s32.totalorder %s982_s30, %s978_s29  ;;  %p172_p2 = scmp.eq.s32.totalorder %s813_s0, 1 }
   0xe   : > { %p177_p3 = scmp.ne.s32.totalorder %s978_s29, %s974_s28  ;;  %s1230_s12 = smov (%p42_p0, %s40_s12), 0 }
   0xf   : > { %1218 = sst [smem:[#allocation20_spill]] %s1230_s12  ;;  %p1082_p4 = por %p172_p2, %p171_p1 }
  0x10   : > { %p178_p5 = scmp.eq.s32.totalorder %s814_s11, 1  ;;  %s156_s15 = ssub.s32 %s990_s9, %s1230_s12 }
  0x11   : > { %p817_p6 = scmp.ge.s32.totalorder %s994_s10, 1  ;;  %p159_p7 = scmp.eq.s32.totalorder %s156_s15, 0 }
  0x12   : > { %p1089_p8 = por %p178_p5, %p177_p3  ;;  %p218_p9 = scmp.lt.s32.totalorder %s994_s10, 3 }
  0x13   : > { %s1095_s17 = scalar_select %p159_p7, %s982_s30, %s161_s13  }
  0x14   : > { %p219_p10 = pnand %p817_p6, %p218_p9 }
  0x15   : > { %s1214_s18 = sand.u32 (!%p219_p10), 1, %s978_s29   ;;  %p248_p11 = scmp.lt.s32.totalorder (!%p219_p10), %s986_s8, 1 }
  0x16   : > { %222 = sbr.rel (%p219_p10) target bundleno = 383 (0x17f), region = 40  ;;  %s1101_s19 = sshll.u32 (!%p219_p10), %s1214_s18, 3 }
  0x17   : > { %s1104_s20 = sshll.u32 (!%p219_p10), %s986_s8, 7 }
  0x18   : > { %s263_s21 = sld [smem:[#allocation5 + %s1104_s20]] (!%p219_p10) }
  0x1b   : > { %s249_s22 = scalar_select %p248_p11, %s986_s8, 1 }
  0x1d   : > { %s819_s23 = sshll.u32 %s249_s22, 3 }
  0x1e   : > { %s1111_s26 = scalar_lea.vmem %s1208_s2, %s819_s23  ;;  %s264_s11 = scalar_lea.vmem %s1207_s1, %s263_s21 }
  0x1f   : > { %v279_v0 = vld [vmem:[%s264_s11] sm:$0x1] }
  0x20   : > { %280 = vst [vmem:[#allocation2] sm:$0x1] %v279_v0 }
  0x21   : > { %298 = vsyncadd [#allocation3], 16  ;;  %s306_s15 = sadd.s32 1, %s1104_s20 }
  0x22   : > { %s307_s18 = sld [smem:[#allocation5 + %s306_s15]] }
  0x28   : > { %s308_s22 = scalar_lea.vmem %s1207_s1, %s307_s18 }
  0x29   : > { %v324_v1 = vld [vmem:[%s308_s22] sm:$0x1] }
  0x2a   : > { %325 = vst [vmem:[#allocation2 + $0x1] sm:$0x1] %v324_v1 }
  0x2b   : > { %343 = vsyncadd [#allocation3], 16  ;;  %s351_s23 = sadd.s32 2, %s1104_s20 }
  0x2c   : > { %s352_s24 = sld [smem:[#allocation5 + %s351_s23]] }
  0x32   : > { %s353_s21 = scalar_lea.vmem %s1207_s1, %s352_s24 }
  0x33   : > { %v369_v2 = vld [vmem:[%s353_s21] sm:$0x1] }
  0x34   : > { %370 = vst [vmem:[#allocation2 + $0x2] sm:$0x1] %v369_v2 }
  0x35   : > { %388 = vsyncadd [#allocation3], 16  ;;  %s396_s0 = sadd.s32 3, %s1104_s20 }
  0x36   : > { %s397_s11 = sld [smem:[#allocation5 + %s396_s0]] }
  0x3c   : > { %s398_s9 = scalar_lea.vmem %s1207_s1, %s397_s11 }
  0x3d   : > { %v414_v3 = vld [vmem:[%s398_s9] sm:$0x1] }
  0x3e   : > { %415 = vst [vmem:[#allocation2 + $0x3] sm:$0x1] %v414_v3 }
  0x3f   : > { %433 = vsyncadd [#allocation3], 16  ;;  %s441_s12 = sadd.s32 4, %s1104_s20 }
  0x40   : > { %s442_s18 = sld [smem:[#allocation5 + %s441_s12]] }
  0x46   : > { %s443_s24 = scalar_lea.vmem %s1207_s1, %s442_s18 }
  0x47   : > { %v459_v4 = vld [vmem:[%s443_s24] sm:$0x1] }
  0x48   : > { %460 = vst [vmem:[#allocation2 + $0x4] sm:$0x1] %v459_v4 }
  0x49   : > { %478 = vsyncadd [#allocation3], 16  ;;  %s486_s25 = sadd.s32 5, %s1104_s20 }
  0x4a   : > { %s487_s27 = sld [smem:[#allocation5 + %s486_s25]] }
  0x50   : > { %s488_s13 = scalar_lea.vmem %s1207_s1, %s487_s27 }
  0x51   : > { %v504_v5 = vld [vmem:[%s488_s13] sm:$0x1] }
  0x52   : > { %505 = vst [vmem:[#allocation2 + $0x5] sm:$0x1] %v504_v5 }
  0x53   : > { %523 = vsyncadd [#allocation3], 16  ;;  %s531_s11 = sadd.s32 6, %s1104_s20 }
  0x54   : > { %s532_s15 = sld [smem:[#allocation5 + %s531_s11]] }
  0x5a   : > { %s533_s18 = scalar_lea.vmem %s1207_s1, %s532_s15 }
  0x5b   : > { %v549_v6 = vld [vmem:[%s533_s18] sm:$0x1] }
  0x5c   : > { %550 = vst [vmem:[#allocation2 + $0x6] sm:$0x1] %v549_v6 }
  0x5d   : > { %568 = vsyncadd [#allocation3], 16  ;;  %s576_s22 = sadd.s32 7, %s1104_s20  ;;  %v614_v8 = vld [vmem:[%s1111_s26] sm:$0xff]  ;;  %v997_v9 = vmov 0  }
  0x5e   : > { %s577_s23 = sld [smem:[#allocation5 + %s576_s22]]  ;;  %891 = vset.pattern.permute.xlu0 %v997_v9  ;;  %vm617_vm0 = vcmp.eq.s32.totalorder %v614_v8, 1 }
  0x5f   : > { %v619_v10 = vsel %vm617_vm0, 1, %v997_v9 }
  0x64   : > { %s578_s27 = scalar_lea.vmem %s1207_s1, %s577_s23 }
  0x65   : > { %v594_v7 = vld [vmem:[%s578_s27] sm:$0x1] }
  0x66   : > { %595 = vst [vmem:[#allocation2 + $0x7] sm:$0x1] %v594_v7 }
  0x67   : > { %613 = vsyncadd [#allocation3], 16  ;;  %621 = vperm.xlu0 %891, %v619_v10   ;;  %v892_v11 = vld [vmem:[%s1210_s4] ss:$0 sm:$0xff]  ;;  %v893_v12 = vld [vmem:[%s1210_s4 + $0x1] ss:$0 sm:$0xff] }
  0x68   : > { %v627_v13 = vld [vmem:[%s1209_s3] sm:$0xff] }
  0xd9   : > { %v622_v14 = vpop.permute.xlu0 %621 }
  0xda   : > { %vm623_vm1 = vcmp.eq.s32.totalorder %v622_v14, 1 }
  0xdb   : > { %v625_v15 = vsel %vm623_vm1, %v893_v12, %v892_v11 }
  0xdc   : > { %v628_v16 = vadd.f32 %v627_v13, %v625_v15 }
  0xdd   : > { %966 = dma.done.wait [#allocation3], 128 }
  0xde   : > { %967 = vsyncadd [#allocation3], 4294967168  ;;  %v632_v17 = vld [vmem:[#allocation2] sm:$0xff]  ;;  %vm634_vm2 = vcmask 261120   ;;  %v998_v22 = vmov 32.0   ;;  %s829_s26 = sshll.u32 %s986_s8, 3 }
  0xdf   : > { %v633_v18 = vadd.f32 %v632_v17, %v628_v16  ;;  %896 = vrcp.f32 %v998_v22  ;;  %v894_v43 = vld [vmem:[%s1211_s5] ss:$0 sm:$0xff]  ;;  %s689_s23 = scalar_lea.hbm %s1213_s7, %s829_s26  ;;  %s1221_s8 = scalar_lea.vmem [#allocation6], %s1101_s19 }
  0xe0   : > { %v895_v46 = vld [vmem:[%s1212_s6] ss:$0 sm:$0xff]  ;;  %s691_s27 = sshll.u32 %s1221_s8, 4  ;;  %s693_s21 = sshll.u32 %s689_s23, 4  ;;  %s692_s27 = int_to_ptr.vmem [resolvable:$true] %s691_s27  ;;  %s694_s21 = int_to_ptr.hbm [resolvable:$true] %s693_s21 }
  0xe1   : > { %v635_v19 = vsel %vm634_vm2, %v633_v18, 0.0  ;;  %v646_v20 = vmul.f32 %v633_v18, %v633_v18  ;;  %s1222_s0 = smov %s1221_s8  ;;  %s1223_s13 = sand.u32 1, %s978_s29  }
  0xe2   : > { %636 = vadd.xlane.f32.xlu0 %v635_v19  ;;  %s678_s20 = scalar_lea.sflag [#allocation7], %s1223_s13  ;;  %s926_s11 = sshra.s32 %s694_s21, 4  ;;  %s927_s11 = int_to_ptr.hbm [resolvable:$true] %s926_s11 }
  0xe3   : > { %v647_v21 = vsel %vm634_vm2, %v646_v20, 0.0  ;;  %s928_s15 = scalar_lea.hbm %s927_s11, 8  ;;  %s932_s12 = scalar_lea.hbm %s1213_s7, 16 }
  0xe4   : > { %p929_p12 = scmp.ne.s32.totalorder %s927_s11, %s928_s15  ;;  %p933_p1 = scmp.lt.s32.totalorder %s927_s11, %s1213_s7 }
  0xe5   : > { %v897_v23 = vpop.eup %896  ;;  %p934_p2 = scmp.lt.s32.totalorder %s932_s12, %s928_s15 }
  0xe6   : > { %v639_v24 = vmul.f32 32.0, %v897_v23  ;;  %vm643_vm3 = vweird.f32 %v897_v23  ;;  %p930_p13 = pnand %p929_p12, %p1082_p4 }
  0xe7   : > { %p935_p3 = por %p934_p2, %p933_p1 }
  0xe8   : > { %v640_v25 = vsub.f32 1.0, %v639_v24  ;;  %p931_p0 = pneg %p930_p13 }
  0xea   : > { %648 = vadd.xlane.f32.xlu0 %v647_v21  ;;  %v641_v26 = vmul.f32 %v897_v23, %v640_v25  ;;  %p936_p5 = pnand %p935_p3, %p931_p0 }
  0xec   : > { %v642_v27 = vadd.f32 %v897_v23, %v641_v26 }
  0xee   : > { %v644_v29 = vsel %vm643_vm3, %v897_v23, %v642_v27 }
 0x155   : > { %v637_v28 = vpop.xlane.xlu0 %636 }
 0x156   : > { %v645_v30 = vmul.f32 %v644_v29, %v637_v28 }
 0x158   : > { %v651_v32 = vmul.f32 %v645_v30, %v645_v30  ;;  %v664_v42 = vsub.f32 %v633_v18, %v645_v30 }
 0x15d   : > { %v649_v31 = vpop.xlane.xlu0 %648 }
 0x15e   : > { %v650_v33 = vmul.f32 %v649_v31, %v644_v29 }
 0x160   : > { %v652_v34 = vsub.f32 %v650_v33, %v651_v32 }
 0x162   : > { %v653_v35 = vadd.f32 1e-12, %v652_v34 }
 0x164   : > { %898 = vrsqrt.f32 %v653_v35  ;;  %vm660_vm5 = vweird.f32 %v653_v35 }
 0x16a   : > { %v899_v36 = vpop.eup %898 }
 0x16b   : > { %v655_v37 = vmul.f32 %v899_v36, %v653_v35  ;;  %vm661_vm4 = vweird.f32 %v899_v36 }
 0x16c   : > { %vm662_vm6 = vmor %vm660_vm5, %vm661_vm4 }
 0x16d   : > { %v656_v38 = vmul.f32 %v899_v36, %v655_v37 }
 0x16f   : > { %v657_v39 = vmul.f32 0.5, %v656_v38 }
 0x171   : > { %v658_v40 = vsub.f32 1.5, %v657_v39 }
 0x173   : > { %v659_v41 = vmul.f32 %v899_v36, %v658_v40 }
 0x175   : > { %v663_v44 = vsel %vm662_vm6, %v899_v36, %v659_v41 }
 0x176   : > { %v665_v45 = vmul.f32 %v664_v42, %v663_v44 }
 0x178   : > { %v670_v47 = vmul.f32 %v894_v43, %v665_v45 }
 0x17a   : > { %v675_v48 = vadd.f32 %v895_v46, %v670_v47 }
 0x17c   : > { %676 = vst.msk [vmem:[%s1222_s0] sm:$0xff] %vm634_vm2, %v675_v48 }
 0x17d   : > { %939 = shalt.err (!%p936_p5)
}
 0x17e   : > { %833 = dma.vmem_to_hbm [thread:$0]  (%p1082_p4), %s692_s27, 128, %s694_s21, %s678_s20  }
 0x17f PF: > { %p839_p6 = scmp.ge.s32.totalorder %s994_s10, 2  ;;  %s705_s19 = sand.u32 1, %s974_s28  }
 0x180   : > { %s706_s23 = scalar_lea.sflag [#allocation7], %s705_s19 }
 0x181   : > { %p836_p7 = pnand %p839_p6, %p1089_p8 }
 0x183   : > { %p837_p9 = pneg %p836_p7 }
 0x185   : > { %969 = dma.done.wait (%p837_p9), %s706_s23, 128  }
 0x186   : > { %971 = vsyncadd (%p837_p9), %s706_s23, 4294967168  ;;  %s28_s10 = sadd.s32 1, %s994_s10   ;;  %s1224_s8 = sld [smem:[#allocation19_spill]] }
 0x187   : > { %p25_p10 = scmp.ge.s32.totalorder %s28_s10, 4   ;;  %s1225_s9 = sld [smem:[#allocation20_spill]] }
 0x188   : > { %s1226_s28 = smov %s978_s29  ;;  %s1227_s29 = smov %s982_s30 }
 0x189   : > { %s1228_s30 = smov %s1095_s17  ;;  %27 = sbr.rel (!%p25_p10) target bundleno = 10 (0xa), region = 363 }
 0x18e   :  { %712 = vsyncpa [#allocation7], 1 }
 0x18f   :  { %714 = vsyncpa [#allocation7 + $0x1], 1 }
 0x190   :  { %715 = vsyncmov [#allocation3] }
 0x193   :  { %s716_s14 = vpop.sfrf %715 }
 0x194   :  { %p832_p4 = scmp.ne.s32.totalorder %s716_s14, 0 }
 0x196   :  { %720 = shalt.err (%p832_p4)  }

</bundles_post_ra>
